<compile_context>
chip_gen: v5e
topology: v5e:2x2
jax: 0.10.0
libtpu: 0.0.40
codegen_flags: <defaults>
</compile_context>

<pallas_src>
import jax
import jax.numpy as jnp
from jax.experimental import pallas as pl
from jax.experimental.pallas import tpu as pltpu

NUM = 100          # fc1 in_features / fc2 out_features
HIDDEN = 300       # fc1 out_features / fc2 in_features

SUBLANE = 8
NUM_PAD = 128      # output lanes padded 100 -> 128 (lane-dense stores)
HIDDEN_PAD = 384   # hidden lanes padded 300 -> 384
TB_MAX = 512       # max batch-tile rows per grid step


def _round_up(n, m):
    return (n + m - 1) // m * m


def mlp_kernel(x_ref, w1_ref, b1_ref, w2_ref, b2_ref, o_ref):
    # x: (TB, NUM) f32        w1: (NUM, HIDDEN_PAD) bf16   b1: (1, HIDDEN_PAD) f32
    # w2: (HIDDEN_PAD, NUM_PAD) bf16  b2: (1, NUM_PAD) f32  o: (TB, NUM_PAD) f32
    x_bf = x_ref[...].astype(jnp.bfloat16)
    h = jnp.dot(x_bf, w1_ref[...], preferred_element_type=jnp.float32)
    h = jnp.maximum(h + b1_ref[...], 0.0)                 # f32 bias + ReLU on VPU
    y = jnp.dot(h.astype(jnp.bfloat16), w2_ref[...],
                preferred_element_type=jnp.float32)
    o_ref[...] = y + b2_ref[...]


def pad_params(w1, b1, w2, b2):
    """Zero-pad (in, out)-layout params; weights to bf16, biases stay f32.

    Padding is exact: padded hidden lanes get bias 0 -> ReLU(0)=0 and hit zero
    rows of w2; padded output lanes are produced as 0 and sliced off.
    """
    w1p = (jnp.zeros((NUM, HIDDEN_PAD), jnp.bfloat16)
           .at[:, :HIDDEN].set(w1.astype(jnp.bfloat16)))
    b1p = jnp.zeros((1, HIDDEN_PAD), jnp.float32).at[0, :HIDDEN].set(b1)
    w2p = (jnp.zeros((HIDDEN_PAD, NUM_PAD), jnp.bfloat16)
           .at[:HIDDEN, :NUM].set(w2.astype(jnp.bfloat16)))
    b2p = jnp.zeros((1, NUM_PAD), jnp.float32).at[0, :NUM].set(b2)
    return w1p, b1p, w2p, b2p


@jax.jit
def net_forward(x, w1p, b1p, w2p, b2p):
    """x: (NUM,) or (B, NUM) float32; params pre-padded via pad_params.
    Returns output with the same leading shape as x."""
    squeeze = x.ndim == 1
    xb = x[None, :] if squeeze else x
    B = xb.shape[0]

    # Bucket the row count: power of two up to TB_MAX, then multiples of TB_MAX.
    bucket = max(SUBLANE, pl.next_power_of_2(B))
    if bucket <= TB_MAX:
        Bp, TB = bucket, bucket
    else:
        Bp, TB = _round_up(B, TB_MAX), TB_MAX

    # Row-only pad (lane dim stays NUM=100 — no padded copy of the features).
    xp = xb if Bp == B else jnp.pad(xb, ((0, Bp - B), (0, 0)))

    out = pl.pallas_call(
        mlp_kernel,
        out_shape=jax.ShapeDtypeStruct((Bp, NUM_PAD), jnp.float32),
        grid=(Bp // TB,),
        in_specs=[
            pl.BlockSpec((TB, NUM), lambda i: (i, 0)),            # x: batch-tiled
            pl.BlockSpec((NUM, HIDDEN_PAD), lambda i: (0, 0)),     # w1: VMEM-resident
            pl.BlockSpec((1, HIDDEN_PAD), lambda i: (0, 0)),       # b1
            pl.BlockSpec((HIDDEN_PAD, NUM_PAD), lambda i: (0, 0)), # w2
            pl.BlockSpec((1, NUM_PAD), lambda i: (0, 0)),          # b2
        ],
        out_specs=pl.BlockSpec((TB, NUM_PAD), lambda i: (i, 0)),
        compiler_params=pltpu.CompilerParams(
            dimension_semantics=("parallel",)),                    # v7x: 2 TCs
    )(xp, w1p, b1p, w2p, b2p)

    y = out[:B, :NUM]
    return y[0] if squeeze else y


def init_params(key):
    """Deterministic init mimicking nn.Linear's U(-1/sqrt(fan_in), 1/sqrt(fan_in))."""
    k1, k2, k3, k4 = jax.random.split(key, 4)
    bound1 = 1.0 / jnp.sqrt(jnp.float32(NUM))
    bound2 = 1.0 / jnp.sqrt(jnp.float32(HIDDEN))
    # Stored already transposed: (in_features, out_features).
    w1 = jax.random.uniform(k1, (NUM, HIDDEN), jnp.float32, -bound1, bound1)
    b1 = jax.random.uniform(k2, (HIDDEN,), jnp.float32, -bound1, bound1)
    w2 = jax.random.uniform(k3, (HIDDEN, NUM), jnp.float32, -bound2, bound2)
    b2 = jax.random.uniform(k4, (NUM,), jnp.float32, -bound2, bound2)
    return w1, b1, w2, b2


if __name__ == "__main__":
    key = jax.random.PRNGKey(0)
    kx, kb, kl, kp = jax.random.split(key, 4)
    w1, b1, w2, b2 = init_params(kp)
    w1p, b1p, w2p, b2p = pad_params(w1, b1, w2, b2)

    def ref_fwd(xin):  # f32 reference of the PyTorch forward
        return jnp.maximum(xin @ w1 + b1, 0.0) @ w2 + b2

    # bf16 weights => loosened tolerance vs. the f32 reference.
    ATOL = RTOL = 5e-2

    # 1) Single-vector forward (the original spec's use case: x = torch.randn(NUM)).
    x = jax.random.normal(kx, (NUM,), jnp.float32)
    y = net_forward(x, w1p, b1p, w2p, b2p)
    jax.block_until_ready(y)
    assert y.shape == (NUM,)
    assert jnp.allclose(y, ref_fwd(x[None, :])[0], atol=ATOL, rtol=RTOL), \
        "single-vector mismatch"

    # 2) Small batch (same compiled bucket as B=1).
    xb = jax.random.normal(kb, (8, NUM), jnp.float32)
    yb = net_forward(xb, w1p, b1p, w2p, b2p)
    jax.block_until_ready(yb)
    assert yb.shape == (8, NUM)
    assert jnp.allclose(yb, ref_fwd(xb), atol=ATOL, rtol=RTOL), "batched mismatch"

    # 3) Batch large enough to exercise the batch-tiled grid (grid=2, partial tail).
    xl = jax.random.normal(kl, (600, NUM), jnp.float32)
    yl = net_forward(xl, w1p, b1p, w2p, b2p)
    jax.block_until_ready(yl)
    assert yl.shape == (600, NUM)
    assert jnp.allclose(yl, ref_fwd(xl), atol=ATOL, rtol=RTOL), "tiled-batch mismatch"

    print("KERNEL_OK")
</pallas_src>

<mosaic_0001>
module attributes {stable_mosaic.version = 11 : i64} {
  func.func @mlp_kernel(%arg0: i32, %arg1: memref<8x100xf32, #tpu.memory_space<vmem>>, %arg2: memref<100x384xbf16, #tpu.memory_space<vmem>>, %arg3: memref<1x384xf32, #tpu.memory_space<vmem>>, %arg4: memref<384x128xbf16, #tpu.memory_space<vmem>>, %arg5: memref<1x128xf32, #tpu.memory_space<vmem>>, %arg6: memref<8x128xf32, #tpu.memory_space<vmem>>) attributes {dimension_semantics = [#tpu.dimension_semantics<parallel>], iteration_bounds = array<i64: 1>, scalar_prefetch = 0 : i64, scratch_operands = 0 : i64, tpu.core_type = #tpu.core_type<tc>, window_params = [{transform_indices = @transform_0, window_bounds = array<i64: 8, 100>}, {pipeline_mode = #tpu.pipeline_mode<synchronous>, transform_indices = @transform_1, window_bounds = array<i64: 100, 384>}, {pipeline_mode = #tpu.pipeline_mode<synchronous>, transform_indices = @transform_2, window_bounds = array<i64: 1, 384>}, {pipeline_mode = #tpu.pipeline_mode<synchronous>, transform_indices = @transform_3, window_bounds = array<i64: 384, 128>}, {pipeline_mode = #tpu.pipeline_mode<synchronous>, transform_indices = @transform_4, window_bounds = array<i64: 1, 128>}, {transform_indices = @transform_5, window_bounds = array<i64: 8, 128>}]} {
    %c0 = arith.constant 0 : index
    %c0_0 = arith.constant 0 : index
    %0 = vector.load %arg1[%c0, %c0_0] : memref<8x100xf32, #tpu.memory_space<vmem>>, vector<8x100xf32>
    %1 = arith.truncf %0 : vector<8x100xf32> to vector<8x100xbf16>
    %c0_1 = arith.constant 0 : index
    %c0_2 = arith.constant 0 : index
    %2 = vector.load %arg2[%c0_1, %c0_2] : memref<100x384xbf16, #tpu.memory_space<vmem>>, vector<100x384xbf16>
    %cst = arith.constant dense<0.000000e+00> : vector<8x384xf32>
    %3 = tpu.matmul %1, %2, %cst {dimension_numbers = #tpu.dot_dimension_numbers<[1], [0], [0], [1], [0, 0, 1, 1], [], []>} : vector<8x100xbf16>, vector<100x384xbf16>, vector<8x384xf32> -> vector<8x384xf32>
    %c0_3 = arith.constant 0 : index
    %c0_4 = arith.constant 0 : index
    %4 = vector.load %arg3[%c0_3, %c0_4] : memref<1x384xf32, #tpu.memory_space<vmem>>, vector<1x384xf32>
    %5 = vector.broadcast %4 : vector<1x384xf32> to vector<8x384xf32>
    %6 = arith.addf %3, %5 : vector<8x384xf32>
    %cst_5 = arith.constant 0.000000e+00 : f32
    %7 = vector.broadcast %cst_5 : f32 to vector<8x384xf32>
    %8 = arith.maximumf %6, %7 : vector<8x384xf32>
    %9 = arith.truncf %8 : vector<8x384xf32> to vector<8x384xbf16>
    %c0_6 = arith.constant 0 : index
    %c0_7 = arith.constant 0 : index
    %10 = vector.load %arg4[%c0_6, %c0_7] : memref<384x128xbf16, #tpu.memory_space<vmem>>, vector<384x128xbf16>
    %cst_8 = arith.constant dense<0.000000e+00> : vector<8x128xf32>
    %11 = tpu.matmul %9, %10, %cst_8 {dimension_numbers = #tpu.dot_dimension_numbers<[1], [0], [0], [1], [0, 0, 1, 1], [], []>} : vector<8x384xbf16>, vector<384x128xbf16>, vector<8x128xf32> -> vector<8x128xf32>
    %c0_9 = arith.constant 0 : index
    %c0_10 = arith.constant 0 : index
    %12 = vector.load %arg5[%c0_9, %c0_10] : memref<1x128xf32, #tpu.memory_space<vmem>>, vector<1x128xf32>
    %13 = vector.broadcast %12 : vector<1x128xf32> to vector<8x128xf32>
    %14 = arith.addf %11, %13 : vector<8x128xf32>
    %c0_11 = arith.constant 0 : index
    %c0_12 = arith.constant 0 : index
    %15 = vector.load %arg6[%c0_11, %c0_12] : memref<8x128xf32, #tpu.memory_space<vmem>>, vector<8x128xf32>
    tpu.vector_store %arg6[%c0_11, %c0_12], %14 {strides = array<i32>} : memref<8x128xf32, #tpu.memory_space<vmem>>, vector<8x128xf32>,
    return
  }
  func.func @transform_0(%arg0: i32) -> (i32, i32) {
    %c0_i32 = arith.constant 0 : i32
    %c0_i32_0 = arith.constant 0 : i32
    return %arg0, %c0_i32 : i32, i32
  }
  func.func @transform_1(%arg0: i32) -> (i32, i32) {
    %c0_i32 = arith.constant 0 : i32
    %c0_i32_0 = arith.constant 0 : i32
    %c0_i32_1 = arith.constant 0 : i32
    return %c0_i32, %c0_i32_0 : i32, i32
  }
  func.func @transform_2(%arg0: i32) -> (i32, i32) {
    %c0_i32 = arith.constant 0 : i32
    %c0_i32_0 = arith.constant 0 : i32
    %c0_i32_1 = arith.constant 0 : i32
    return %c0_i32, %c0_i32_0 : i32, i32
  }
  func.func @transform_3(%arg0: i32) -> (i32, i32) {
    %c0_i32 = arith.constant 0 : i32
    %c0_i32_0 = arith.constant 0 : i32
    %c0_i32_1 = arith.constant 0 : i32
    return %c0_i32, %c0_i32_0 : i32, i32
  }
  func.func @transform_4(%arg0: i32) -> (i32, i32) {
    %c0_i32 = arith.constant 0 : i32
    %c0_i32_0 = arith.constant 0 : i32
    %c0_i32_1 = arith.constant 0 : i32
    return %c0_i32, %c0_i32_0 : i32, i32
  }
  func.func @transform_5(%arg0: i32) -> (i32, i32) {
    %c0_i32 = arith.constant 0 : i32
    %c0_i32_0 = arith.constant 0 : i32
    return %arg0, %c0_i32 : i32, i32
  }
}

</mosaic_0001>

<bundles_post_ra>
// kernel: net_forward.1
= control target key start
LH: loop header
LB: loop body
LE: loop exit
PB: predicated region body
PF: predicated region fallthrough
CT: control target
= control target key end

     0   :  { %10 = vsyncpa [#allocation3], 0  ;;  %s826_s0 = inlined_call_operand.vmem [shape: f32[8,100], index: 0, kind: input, shape index: {}]   ;;  %s827_s1 = inlined_call_operand.hbm [shape: bf16[100,384], index: 1, kind: input, shape index: {}]   ;;  %s828_s2 = inlined_call_operand.vmem [shape: f32[1,384], index: 2, kind: input, shape index: {}]   ;;  %s829_s3 = inlined_call_operand.hbm [shape: bf16[384,128], index: 3, kind: input, shape index: {}]   ;;  %s830_s4 = inlined_call_operand.vmem [shape: f32[1,128], index: 4, kind: input, shape index: {}]   ;;  %s831_s5 = inlined_call_operand.vmem [shape: f32[8,128], index: 5, kind: output, shape index: {}]  }
   0x1   :  { %s18_s20 = sshll.u32 %s827_s1, 4  ;;  %s19_s20 = int_to_ptr.hbm [resolvable:$true] %s18_s20 }
   0x2   :  { %11 = vsyncpa [#allocation5], 0  ;;  %s766_s21 = smov [#allocation2]   ;;  %s33_s25 = sshll.u32 %s829_s3, 4  ;;  %s34_s25 = int_to_ptr.hbm [resolvable:$true] %s33_s25 }
   0x3   :  { %s20_s22 = sshll.u32 %s766_s21, 4  ;;  %s767_s26 = smov 192   ;;  %s21_s22 = int_to_ptr.vmem [resolvable:$true] %s20_s22 }
   0x4   :  { %s768_s27 = smov 12   ;;  %s769_s28 = smov [#allocation4]  }
   0x5   :  { %26 = dma.hbm_to_vmem [thread:$0]  %s19_s20, 2496, %s21_s22, [#allocation3], %s767_s26, %s767_s26, %s768_s27  }
   0x6   :  { %s35_s29 = sshll.u32 %s769_s28, 4  ;;  %s770_s30 = smov 64   ;;  %s36_s29 = int_to_ptr.vmem [resolvable:$true] %s35_s29 }
   0x7   :  { %s771_s6 = smov 4  }
   0x8   :  { %41 = dma.hbm_to_vmem [thread:$0]  %s34_s25, 3072, %s36_s29, [#allocation5], %s770_s30, %s770_s30, %s771_s6  }
   0x9   :  { %762 = dma.done.wait [#allocation3], 2496  }
   0xa   :  { %763 = vsyncadd [#allocation3], 4294964800 }
   0xb   :  { %764 = dma.done.wait [#allocation5], 3072  }
   0xc   :  { %765 = vsyncadd [#allocation5], 4294964224  ;;  %v79_v0 = vld [vmem:[#allocation2 + $0x90] sm:$0x33]  ;;  %vm197_vm0 = vcmask 1041408   ;;  %v53_v45 = vld [vmem:[%s826_s0] sm:$0xff] }
   0xd   :  { %v151_v1 = vunpack.c.l.b16 %v79_v0  ;;  %v152_v2 = vunpack.c.h.b16 %v79_v0  ;;  %v556_v4 = vld [vmem:[#allocation2 + $0x78] sm:$0xf]  ;;  %v681_v5 = vld [vmem:[#allocation2 + $0x80] sm:$0xf0]  ;;  %v680_v7 = vld [vmem:[#allocation2 + $0x7c] sm:$0xf]  ;;  %v54_v53 = vpack.c.bf16 %v53_v45, %v53_v45 }
   0xe   :  { %v558_v10 = vld [vmem:[#allocation2 + $0x84] sm:$0xf0]  ;;  %v557_v11 = vor.u32 %v681_v5, %v556_v4  ;;  %v544_v12 = vld [vmem:[#allocation2 + $0x60] sm:$0xf]  ;;  %v678_v14 = vld [vmem:[#allocation2 + $0x68] sm:$0xf0] }
   0xf   :  { %v172_v3 = vpack.c.b16 %v151_v1, %v151_v1  ;;  %v173_v6 = vpack.c.b16 %v152_v2, %v152_v2  ;;  %v561_v13 = vor.u32 %v680_v7, %v558_v10  ;;  %v677_v15 = vld [vmem:[#allocation2 + $0x64] sm:$0xf]  ;;  %v546_v16 = vld [vmem:[#allocation2 + $0x6c] sm:$0xf0]  ;;  %v545_v17 = vor.u32 %v678_v14, %v544_v12  ;;  %v532_v18 = vld [vmem:[#allocation2 + $0x48] sm:$0xf] }
  0x10   :  { %v549_v19 = vor.u32 %v677_v15, %v546_v16  ;;  %v675_v20 = vld [vmem:[#allocation2 + $0x50] sm:$0xf0]  ;;  %v674_v21 = vld [vmem:[#allocation2 + $0x4c] sm:$0xf]  ;;  %v534_v22 = vld [vmem:[#allocation2 + $0x54] sm:$0xf0] }
  0x11   :  { %v199_v8 = vsel %vm197_vm0, %v172_v3, 0  ;;  %v202_v9 = vsel %vm197_vm0, %v173_v6, 0  ;;  %v533_v23 = vor.u32 %v675_v20, %v532_v18  ;;  %v520_v24 = vld [vmem:[#allocation2 + $0x30] sm:$0xf]  ;;  %v537_v25 = vor.u32 %v674_v21, %v534_v22  ;;  %v672_v26 = vld [vmem:[#allocation2 + $0x38] sm:$0xf0] }
  0x12   :  { %208 = vmatpush.bf16.msra.mxu2 %v199_v8  ;;  %221 = vmatpush.bf16.msra.mxu1 %v202_v9  ;;  %v671_v27 = vld [vmem:[#allocation2 + $0x34] sm:$0xf]  ;;  %v522_v28 = vld [vmem:[#allocation2 + $0x3c] sm:$0xf0]  ;;  %v80_v29 = vld [vmem:[#allocation2 + $0x98] sm:$0x3]  ;;  %v521_v30 = vor.u32 %v672_v26, %v520_v24 }
  0x13   :  { %v508_v31 = vld [vmem:[#allocation2 + $0x18] sm:$0xf]  ;;  %v525_v32 = vor.u32 %v671_v27, %v522_v28  ;;  %v669_v33 = vld [vmem:[#allocation2 + $0x20] sm:$0xf0]  ;;  %v668_v34 = vld [vmem:[#allocation2 + $0x1c] sm:$0xf]  ;;  %v153_v36 = vunpack.c.l.b16 %v80_v29 }
  0x14   :  { %v510_v35 = vld [vmem:[#allocation2 + $0x24] sm:$0xf0]  ;;  %v509_v37 = vor.u32 %v669_v33, %v508_v31  ;;  %v496_v38 = vld [vmem:[#allocation2] sm:$0xf]  ;;  %v666_v40 = vld [vmem:[#allocation2 + $0x8] sm:$0xf0] }
  0x15   :  { %v513_v39 = vor.u32 %v668_v34, %v510_v35  ;;  %v665_v41 = vld [vmem:[#allocation2 + $0x4] sm:$0xf]  ;;  %v498_v42 = vld [vmem:[#allocation2 + $0xc] sm:$0xf0]  ;;  %v174_v43 = vpack.c.b16 %v153_v36, %v153_v36  ;;  %v497_v44 = vor.u32 %v666_v40, %v496_v38  ;;  %v690_v47 = vld [vmem:[#allocation4 + $0x38] sm:$0xff]  ;;  %vm193_vm1 = vcmask 818176  }
  0x16   :  { %209 = vmatpush.bf16.msra.mxu2 %v557_v11  ;;  %222 = vmatpush.bf16.msra.mxu1 %v561_v13  ;;  %v501_v46 = vor.u32 %v665_v41, %v498_v42  ;;  %v698_v48 = vld [vmem:[#allocation4 + $0x78] sm:$0xff]  ;;  %v564_v50 = vld [vmem:[#allocation2 + $0x80] sm:$0xf]  ;;  %v682_v51 = vld [vmem:[#allocation2 + $0x88] sm:$0xf0] }
  0x17   :  { %v205_v49 = vsel %vm197_vm0, %v174_v43, 0  ;;  %448 = vmatpush.bf16.msra.mxu3 %v690_v47  ;;  %v689_v52 = vld [vmem:[#allocation4 + $0x30] sm:$0xff]  ;;  %461 = vmatpush.bf16.msra.mxu0 %v698_v48  ;;  %v565_v55 = vor.u32 %v682_v51, %v564_v50  ;;  %v552_v56 = vld [vmem:[#allocation2 + $0x68] sm:$0xf]  ;;  %v679_v57 = vld [vmem:[#allocation2 + $0x70] sm:$0xf0] }
  0x18   :  { %v697_v54 = vld [vmem:[#allocation4 + $0x70] sm:$0xff]  ;;  %v688_v58 = vld [vmem:[#allocation4 + $0x28] sm:$0xff]  ;;  %v553_v59 = vor.u32 %v679_v57, %v552_v56  ;;  %v676_v61 = vld [vmem:[#allocation2 + $0x58] sm:$0xf0] }
  0x19   :  { %v540_v60 = vld [vmem:[#allocation2 + $0x50] sm:$0xf]  ;;  %v687_v62 = vld [vmem:[#allocation4 + $0x20] sm:$0xff]  ;;  %v528_v0 = vld [vmem:[#allocation2 + $0x38] sm:$0xf] }
  0x1a   :  { %210 = vmatpush.bf16.msra.mxu2 %v545_v17  ;;  %223 = vmatpush.bf16.msra.mxu1 %v549_v19  ;;  %v541_v63 = vor.u32 %v676_v61, %v540_v60  ;;  %v673_v1 = vld [vmem:[#allocation2 + $0x40] sm:$0xf0]  ;;  %v686_v2 = vld [vmem:[#allocation4 + $0x18] sm:$0xff]  ;;  %v516_v4 = vld [vmem:[#allocation2 + $0x20] sm:$0xf] }
  0x1b   :  { %449 = vmatpush.bf16.msra.mxu3 %v689_v52  ;;  %462 = vmatpush.bf16.msra.mxu0 %v697_v54  ;;  %v529_v3 = vor.u32 %v673_v1, %v528_v0  ;;  %v670_v5 = vld [vmem:[#allocation2 + $0x28] sm:$0xf0]  ;;  %v504_v8 = vld [vmem:[#allocation2 + $0x8] sm:$0xf]  ;;  %v667_v9 = vld [vmem:[#allocation2 + $0x10] sm:$0xf0] }
  0x1c   :  { %v685_v6 = vld [vmem:[#allocation4 + $0x10] sm:$0xff]  ;;  %v517_v7 = vor.u32 %v670_v5, %v516_v4  ;;  %v505_v10 = vor.u32 %v667_v9, %v504_v8  ;;  %v684_v11 = vld [vmem:[#allocation4 + $0x8] sm:$0xff]  ;;  %v706_v13 = vld [vmem:[#allocation4 + $0xb8] sm:$0xff] }
  0x1d   :  { %v696_v12 = vld [vmem:[#allocation4 + $0x68] sm:$0xff]  ;;  %v683_v14 = vld [vmem:[#allocation4] sm:$0xff]  ;;  %v705_v16 = vld [vmem:[#allocation4 + $0xb0] sm:$0xff] }
  0x1e   :  { %211 = vmatpush.bf16.msra.mxu2 %v533_v23  ;;  %224 = vmatpush.bf16.msra.mxu1 %v537_v25  ;;  %v695_v15 = vld [vmem:[#allocation4 + $0x60] sm:$0xff]  ;;  %v694_v17 = vld [vmem:[#allocation4 + $0x58] sm:$0xff]  ;;  %v704_v18 = vld [vmem:[#allocation4 + $0xa8] sm:$0xff] }
  0x1f   :  { %450 = vmatpush.bf16.msra.mxu3 %v688_v58  ;;  %463 = vmatpush.bf16.msra.mxu0 %v696_v12  ;;  %v693_v19 = vld [vmem:[#allocation4 + $0x50] sm:$0xff]  ;;  %v703_v20 = vld [vmem:[#allocation4 + $0xa0] sm:$0xff]  ;;  %v692_v21 = vld [vmem:[#allocation4 + $0x48] sm:$0xff] }
  0x20   :  { %v702_v22 = vld [vmem:[#allocation4 + $0x98] sm:$0xff]  ;;  %v691_v23 = vld [vmem:[#allocation4 + $0x40] sm:$0xff]  ;;  %v701_v24 = vld [vmem:[#allocation4 + $0x90] sm:$0xff] }
  0x21   :  { %v81_v25 = vld [vmem:[%s828_s2] sm:$0x7]  ;;  %v700_v27 = vld [vmem:[#allocation4 + $0x88] sm:$0xff] }
  0x22   :  { %212 = vmatpush.bf16.msra.mxu2 %v521_v30  ;;  %225 = vmatpush.bf16.msra.mxu1 %v525_v32  ;;  %v84_v26 = vperm.slane %v81_v25, 1  ;;  %v699_v30 = vld [vmem:[#allocation4 + $0x80] sm:$0xff]  ;;  %v83_v31 = vperm.slane %v81_v25, 0  ;;  %v85_v40 = vperm.slane %v81_v25, 2 }
  0x23   :  { %451 = vmatpush.bf16.msra.mxu3 %v687_v62  ;;  %464 = vmatpush.bf16.msra.mxu0 %v695_v15  ;;  %v713_v50 = vld [vmem:[%s830_s4] ss:$0 sm:$0xff] }
  0x26   :  { %213 = vmatpush.bf16.msra.mxu2 %v509_v37  ;;  %226 = vmatpush.bf16.msra.mxu1 %v513_v39 }
  0x27   :  { %452 = vmatpush.bf16.msra.mxu3 %v686_v2  ;;  %465 = vmatpush.bf16.msra.mxu0 %v694_v17 }
  0x2a   :  { %214 = vmatpush.bf16.msra.mxu2 %v497_v44  ;;  %227 = vmatpush.bf16.msra.mxu1 %v501_v46 }
  0x2b   :  { %453 = vmatpush.bf16.msra.mxu3 %v685_v6  ;;  %466 = vmatpush.bf16.msra.mxu0 %v693_v19 }
  0x2d   :  { %566 = vmatmul.msk.bf16.vlgmr.msra.gmra.mxu2 %vm193_vm1, %v54_v53  ;;  %567 = vmatmul.msk.bf16.vlgmr.msra.gmra.mxu1 %vm193_vm1, %v54_v53 }
  0x2e   :  { %234 = vmatpush.bf16.msrb.mxu2 %v205_v49  ;;  %474 = vmatpush.bf16.msrb.mxu1 %v706_v13 }
  0x2f   :  { %454 = vmatpush.bf16.msra.mxu3 %v684_v11  ;;  %467 = vmatpush.bf16.msra.mxu0 %v692_v21 }
  0x32   :  { %235 = vmatpush.bf16.msrb.mxu2 %v565_v55  ;;  %475 = vmatpush.bf16.msrb.mxu1 %v705_v16 }
  0x33   :  { %455 = vmatpush.bf16.msra.mxu3 %v683_v14  ;;  %468 = vmatpush.bf16.msra.mxu0 %v691_v23 }
  0x36   :  { %236 = vmatpush.bf16.msrb.mxu2 %v553_v59  ;;  %476 = vmatpush.bf16.msrb.mxu1 %v704_v18 }
  0x3a   :  { %237 = vmatpush.bf16.msrb.mxu2 %v541_v63  ;;  %477 = vmatpush.bf16.msrb.mxu1 %v703_v20 }
  0x3e   :  { %238 = vmatpush.bf16.msrb.mxu2 %v529_v3  ;;  %478 = vmatpush.bf16.msrb.mxu1 %v702_v22 }
  0x42   :  { %239 = vmatpush.bf16.msrb.mxu2 %v517_v7  ;;  %479 = vmatpush.bf16.msrb.mxu1 %v701_v24 }
  0x46   :  { %240 = vmatpush.bf16.msrb.mxu2 %v505_v10  ;;  %480 = vmatpush.bf16.msrb.mxu1 %v700_v27 }
  0x49   :  { %568 = vmatmul.msk.bf16.vlgmr.msrb.gmra.mxu2 %vm193_vm1, %v54_v53 }
  0x4a   :  { %481 = vmatpush.bf16.msrb.mxu1 %v699_v30 }
  0xaa   :  { %v229_v28 = vpop.f32.mrf.mxu1 }
  0xab   :  { %v230_v29 = vadd.f32 %v229_v28, %v84_v26 }
  0xad   :  { %v247_v32 = vmax.f32 %v230_v29, 0.0 }
  0xaf   :  { %v250_v33 = vpack.c.bf16 %v247_v32, %v247_v32 }
  0xb0   :  { %v216_v34 = vpop.f32.mrf.mxu2 }
  0xb1   :  { %v217_v35 = vadd.f32 %v216_v34, %v83_v31  ;;  %469 = vmatmul.bf16.vlgmr.msra.gmra.mxu0 %v250_v33 }
  0xb2   :  { %v231_v36 = vpop.f32.mrf.mxu1 }
  0xb3   :  { %v246_v37 = vmax.f32 %v217_v35, 0.0 }
  0xb5   :  { %v249_v38 = vpack.c.bf16 %v246_v37, %v246_v37 }
  0xb7   :  { %456 = vmatmul.bf16.vlgmr.msra.gmra.mxu3 %v249_v38 }
  0xb8   :  { %v218_v39 = vpop.f32.mrf.mxu2 }
  0xcc   :  { %v242_v41 = vpop.f32.mrf.mxu2 }
  0xcd   :  { %v243_v42 = vadd.f32 %v242_v41, %v85_v40 }
  0xcf   :  { %v248_v43 = vmax.f32 %v243_v42, 0.0 }
  0xd1   :  { %v251_v44 = vpack.c.bf16 %v248_v43, %v248_v43 }
  0xd3   :  { %482 = vmatmul.bf16.vlgmr.msrb.gmra.mxu1 %v251_v44 }
  0xd4   :  { %v244_v45 = vpop.f32.mrf.mxu2 }
 0x12e   :  { %v470_v46 = vpop.f32.mrf.mxu0 }
 0x136   :  { %v472_v47 = vpop.f32.mrf.mxu0 }
 0x13a   :  { %v457_v48 = vpop.f32.mrf.mxu3 }
 0x13b   :  { %v458_v51 = vadd.f32 %v713_v50, %v457_v48 }
 0x13d   :  { %v471_v52 = vadd.f32 %v470_v46, %v458_v51 }
 0x142   :  { %v459_v49 = vpop.f32.mrf.mxu3 }
 0x150   :  { %v483_v53 = vpop.f32.mrf.mxu1 }
 0x151   :  { %v484_v54 = vadd.f32 %v483_v53, %v471_v52 }
 0x153   :  { %487 = vst [vmem:[%s831_s5] sm:$0xff] %v484_v54 }
 0x158   :  { %v485_v55 = vpop.f32.mrf.mxu1 }
 0x159   :  { %492 = vsyncpa [#allocation3], 1 }
 0x15a   :  { %493 = vsyncpa [#allocation5], 1 }

</bundles_post_ra>
